<compile_context>
chip_gen: v6e
topology: v6e:2x2x1
jax: 0.10.0
libtpu: 0.0.40
codegen_flags: <defaults>
</compile_context>

<pallas_src>
import jax
import jax.numpy as jnp
from jax.experimental import pallas as pl
from jax.experimental.pallas import tpu as pltpu


OUT_FEATURES = 10


def generator_kernel(z_ref, w1_ref, b1_ref, w2_ref, b2_ref, w3_ref, b3_ref, o_ref):
    # z_ref: (TB, 16) bf16      w1: (16, 128) bf16   b1: (1, 128) f32
    # w2: (128, 256) bf16       b2: (1, 256) f32
    # w3: (256, 10)  bf16       b3: (1, 10)  f32
    # o_ref: (TB, 10) f32  (10-wide output: 12.8x less HBM writeback than a
    #                       128-lane padded f32 store)
    h1 = jnp.dot(z_ref[...], w1_ref[...], preferred_element_type=jnp.float32)
    h1 = jnp.maximum(h1 + b1_ref[...], 0.0)                       # ReLU (f32)

    h2 = jnp.dot(h1.astype(jnp.bfloat16), w2_ref[...],
                 preferred_element_type=jnp.float32)
    h2 = jnp.maximum(h2 + b2_ref[...], 0.0)                       # ReLU (f32)

    h3 = jnp.dot(h2.astype(jnp.bfloat16), w3_ref[...],
                 preferred_element_type=jnp.float32) + b3_ref[...]
    o_ref[...] = jnp.tanh(h3).astype(o_ref.dtype)                 # Tanh (f32)


def _round_up(x, m):
    return ((x + m - 1) // m) * m


def _choose_tiling(B, tb, two_tc_threshold=1024):
    """Return (B_pad, tb_eff, n_tiles) with minimal padding waste.

    - Batch is padded to a multiple of 8 (sublane granule), never to a full
      multiple of `tb`, so padding waste is <= ~8 * n_tiles rows.
    - For large batches, force >= 2 grid steps so the "parallel" grid axis
      can shard across both v7x TensorCores.
    """
    B8 = _round_up(B, 8)
    min_tiles = 2 if B8 >= two_tc_threshold else 1
    n_tiles = max(pl.cdiv(B8, tb), min_tiles)
    tb_eff = _round_up(pl.cdiv(B8, n_tiles), 8)
    B_pad = n_tiles * tb_eff
    return B_pad, tb_eff, n_tiles


def generator_forward(z, params, *, tb=2048):
    """z: [B, 16] float32. params: dict of w1,b1,w2,b2,w3,b3. Returns [B, 10] f32."""
    B, D_in = z.shape
    assert D_in == 16

    B_pad, tb_eff, n_tiles = _choose_tiling(B, tb)
    if B_pad != B:
        z = jnp.pad(z, ((0, B_pad - B), (0, 0)))

    # bf16 matmul operands, f32 biases.
    zb = z.astype(jnp.bfloat16)
    w1 = params["w1"].astype(jnp.bfloat16)
    w2 = params["w2"].astype(jnp.bfloat16)
    w3 = params["w3"].astype(jnp.bfloat16)
    b1 = params["b1"].astype(jnp.float32)
    b2 = params["b2"].astype(jnp.float32)
    b3 = params["b3"].astype(jnp.float32)

    # Constant index_map -> the weight/bias tiles are revisit-elided (fetched
    # once per call, not per grid step).
    full = lambda arr: pl.BlockSpec(arr.shape, lambda i: (0, 0))

    out = pl.pallas_call(
        generator_kernel,
        out_shape=jax.ShapeDtypeStruct((B_pad, OUT_FEATURES), jnp.float32),
        grid_spec=pltpu.PrefetchScalarGridSpec(
            num_scalar_prefetch=0,
            grid=(n_tiles,),
            in_specs=[
                pl.BlockSpec((tb_eff, 16), lambda i: (i, 0)),   # z tile
                full(w1), full(b1),
                full(w2), full(b2),
                full(w3), full(b3),
            ],
            # Block last dim (10) equals the full array dim, so the (8,128)
            # rule is satisfied; HBM write DMA is only 40 B/row.
            out_specs=pl.BlockSpec((tb_eff, OUT_FEATURES), lambda i: (i, 0)),
        ),
        compiler_params=pltpu.CompilerParams(
            # Footprint at tb=2048 is ~8 MB -> default scoped VMEM limit is
            # plenty on v5e/v6e (128 MiB) and v7x (64 MiB); no explicit
            # vmem_limit_bytes needed.
            dimension_semantics=("parallel",),
        ),
    )(zb, w1, b1, w2, b2, w3, b3)

    return out[:B]


def init_params(key):
    """Deterministic init matching PyTorch nn.Linear shapes (stored transposed)."""
    def linear(k, fan_in, fan_out):
        kw, kb = jax.random.split(k)
        bound = 1.0 / jnp.sqrt(fan_in)
        w = jax.random.uniform(kw, (fan_in, fan_out), jnp.float32, -bound, bound)
        b = jax.random.uniform(kb, (1, fan_out), jnp.float32, -bound, bound)
        return w, b

    k1, k2, k3 = jax.random.split(key, 3)
    w1, b1 = linear(k1, 16, 128)
    w2, b2 = linear(k2, 128, 256)
    w3, b3 = linear(k3, 256, 10)
    return {"w1": w1, "b1": b1, "w2": w2, "b2": b2, "w3": w3, "b3": b3}


def generator_ref(z, p):
    """Pure-f32 JAX reference (PyTorch-equivalent forward)."""
    h1 = jax.nn.relu(z @ p["w1"] + p["b1"])
    h2 = jax.nn.relu(h1 @ p["w2"] + p["b2"])
    return jnp.tanh(h2 @ p["w3"] + p["b3"])


if __name__ == "__main__":
    key = jax.random.PRNGKey(0)
    k_params, k_z = jax.random.split(key)

    params = init_params(k_params)
    z = jax.random.normal(k_z, (8, 16), jnp.float32)   # batch=8, latent dim=16

    out = generator_forward(z, params)
    out = jax.block_until_ready(out)

    ref = generator_ref(z, params)
    assert out.shape == (8, 10)
    # bf16 matmul operands with f32 accumulation: loosen tolerance vs f32 ref.
    assert jnp.allclose(out, ref, atol=2e-2, rtol=2e-2), (
        float(jnp.max(jnp.abs(out - ref))))

    print("KERNEL_OK")
</pallas_src>

<mosaic_0001>
module attributes {stable_mosaic.version = 11 : i64} {
  func.func @generator_kernel(%arg0: i32, %arg1: memref<8x16xbf16, #tpu.memory_space<vmem>>, %arg2: memref<16x128xbf16, #tpu.memory_space<vmem>>, %arg3: memref<1x128xf32, #tpu.memory_space<vmem>>, %arg4: memref<128x256xbf16, #tpu.memory_space<vmem>>, %arg5: memref<1x256xf32, #tpu.memory_space<vmem>>, %arg6: memref<256x10xbf16, #tpu.memory_space<vmem>>, %arg7: memref<1x10xf32, #tpu.memory_space<vmem>>, %arg8: memref<8x10xf32, #tpu.memory_space<vmem>>) attributes {dimension_semantics = [#tpu.dimension_semantics<parallel>], iteration_bounds = array<i64: 1>, scalar_prefetch = 0 : i64, scratch_operands = 0 : i64, tpu.core_type = #tpu.core_type<tc>, window_params = [{transform_indices = @transform_0, window_bounds = array<i64: 8, 16>}, {pipeline_mode = #tpu.pipeline_mode<synchronous>, transform_indices = @transform_1, window_bounds = array<i64: 16, 128>}, {pipeline_mode = #tpu.pipeline_mode<synchronous>, transform_indices = @transform_2, window_bounds = array<i64: 1, 128>}, {pipeline_mode = #tpu.pipeline_mode<synchronous>, transform_indices = @transform_3, window_bounds = array<i64: 128, 256>}, {pipeline_mode = #tpu.pipeline_mode<synchronous>, transform_indices = @transform_4, window_bounds = array<i64: 1, 256>}, {pipeline_mode = #tpu.pipeline_mode<synchronous>, transform_indices = @transform_5, window_bounds = array<i64: 256, 10>}, {pipeline_mode = #tpu.pipeline_mode<synchronous>, transform_indices = @transform_6, window_bounds = array<i64: 1, 10>}, {transform_indices = @transform_7, window_bounds = array<i64: 8, 10>}]} {
    %c0 = arith.constant 0 : index
    %c0_0 = arith.constant 0 : index
    %0 = vector.load %arg1[%c0, %c0_0] : memref<8x16xbf16, #tpu.memory_space<vmem>>, vector<8x16xbf16>
    %c0_1 = arith.constant 0 : index
    %c0_2 = arith.constant 0 : index
    %1 = vector.load %arg2[%c0_1, %c0_2] : memref<16x128xbf16, #tpu.memory_space<vmem>>, vector<16x128xbf16>
    %cst = arith.constant dense<0.000000e+00> : vector<8x128xf32>
    %2 = tpu.matmul %0, %1, %cst {dimension_numbers = #tpu.dot_dimension_numbers<[1], [0], [0], [1], [0, 0, 1, 1], [], []>} : vector<8x16xbf16>, vector<16x128xbf16>, vector<8x128xf32> -> vector<8x128xf32>
    %c0_3 = arith.constant 0 : index
    %c0_4 = arith.constant 0 : index
    %3 = vector.load %arg3[%c0_3, %c0_4] : memref<1x128xf32, #tpu.memory_space<vmem>>, vector<1x128xf32>
    %4 = vector.broadcast %3 : vector<1x128xf32> to vector<8x128xf32>
    %5 = arith.addf %2, %4 : vector<8x128xf32>
    %cst_5 = arith.constant 0.000000e+00 : f32
    %6 = vector.broadcast %cst_5 : f32 to vector<8x128xf32>
    %7 = arith.maximumf %5, %6 : vector<8x128xf32>
    %8 = arith.truncf %7 : vector<8x128xf32> to vector<8x128xbf16>
    %c0_6 = arith.constant 0 : index
    %c0_7 = arith.constant 0 : index
    %9 = vector.load %arg4[%c0_6, %c0_7] : memref<128x256xbf16, #tpu.memory_space<vmem>>, vector<128x256xbf16>
    %cst_8 = arith.constant dense<0.000000e+00> : vector<8x256xf32>
    %10 = tpu.matmul %8, %9, %cst_8 {dimension_numbers = #tpu.dot_dimension_numbers<[1], [0], [0], [1], [0, 0, 1, 1], [], []>} : vector<8x128xbf16>, vector<128x256xbf16>, vector<8x256xf32> -> vector<8x256xf32>
    %c0_9 = arith.constant 0 : index
    %c0_10 = arith.constant 0 : index
    %11 = vector.load %arg5[%c0_9, %c0_10] : memref<1x256xf32, #tpu.memory_space<vmem>>, vector<1x256xf32>
    %12 = vector.broadcast %11 : vector<1x256xf32> to vector<8x256xf32>
    %13 = arith.addf %10, %12 : vector<8x256xf32>
    %cst_11 = arith.constant 0.000000e+00 : f32
    %14 = vector.broadcast %cst_11 : f32 to vector<8x256xf32>
    %15 = arith.maximumf %13, %14 : vector<8x256xf32>
    %16 = arith.truncf %15 : vector<8x256xf32> to vector<8x256xbf16>
    %c0_12 = arith.constant 0 : index
    %c0_13 = arith.constant 0 : index
    %17 = vector.load %arg6[%c0_12, %c0_13] : memref<256x10xbf16, #tpu.memory_space<vmem>>, vector<256x10xbf16>
    %cst_14 = arith.constant dense<0.000000e+00> : vector<8x10xf32>
    %18 = tpu.matmul %16, %17, %cst_14 {dimension_numbers = #tpu.dot_dimension_numbers<[1], [0], [0], [1], [0, 0, 1, 1], [], []>} : vector<8x256xbf16>, vector<256x10xbf16>, vector<8x10xf32> -> vector<8x10xf32>
    %c0_15 = arith.constant 0 : index
    %c0_16 = arith.constant 0 : index
    %19 = vector.load %arg7[%c0_15, %c0_16] : memref<1x10xf32, #tpu.memory_space<vmem>>, vector<1x10xf32>
    %20 = vector.broadcast %19 : vector<1x10xf32> to vector<8x10xf32>
    %21 = arith.addf %18, %20 : vector<8x10xf32>
    %22 = math.tanh %21 : vector<8x10xf32>
    %c0_17 = arith.constant 0 : index
    %c0_18 = arith.constant 0 : index
    %23 = vector.load %arg8[%c0_17, %c0_18] : memref<8x10xf32, #tpu.memory_space<vmem>>, vector<8x10xf32>
    tpu.vector_store %arg8[%c0_17, %c0_18], %22 {strides = array<i32>} : memref<8x10xf32, #tpu.memory_space<vmem>>, vector<8x10xf32>,
    return
  }
  func.func @transform_0(%arg0: i32) -> (i32, i32) {
    %c0_i32 = arith.constant 0 : i32
    %c0_i32_0 = arith.constant 0 : i32
    return %arg0, %c0_i32 : i32, i32
  }
  func.func @transform_1(%arg0: i32) -> (i32, i32) {
    %c0_i32 = arith.constant 0 : i32
    %c0_i32_0 = arith.constant 0 : i32
    %c0_i32_1 = arith.constant 0 : i32
    return %c0_i32, %c0_i32_0 : i32, i32
  }
  func.func @transform_2(%arg0: i32) -> (i32, i32) {
    %c0_i32 = arith.constant 0 : i32
    %c0_i32_0 = arith.constant 0 : i32
    %c0_i32_1 = arith.constant 0 : i32
    return %c0_i32, %c0_i32_0 : i32, i32
  }
  func.func @transform_3(%arg0: i32) -> (i32, i32) {
    %c0_i32 = arith.constant 0 : i32
    %c0_i32_0 = arith.constant 0 : i32
    %c0_i32_1 = arith.constant 0 : i32
    return %c0_i32, %c0_i32_0 : i32, i32
  }
  func.func @transform_4(%arg0: i32) -> (i32, i32) {
    %c0_i32 = arith.constant 0 : i32
    %c0_i32_0 = arith.constant 0 : i32
    %c0_i32_1 = arith.constant 0 : i32
    return %c0_i32, %c0_i32_0 : i32, i32
  }
  func.func @transform_5(%arg0: i32) -> (i32, i32) {
    %c0_i32 = arith.constant 0 : i32
    %c0_i32_0 = arith.constant 0 : i32
    %c0_i32_1 = arith.constant 0 : i32
    return %c0_i32, %c0_i32_0 : i32, i32
  }
  func.func @transform_6(%arg0: i32) -> (i32, i32) {
    %c0_i32 = arith.constant 0 : i32
    %c0_i32_0 = arith.constant 0 : i32
    %c0_i32_1 = arith.constant 0 : i32
    return %c0_i32, %c0_i32_0 : i32, i32
  }
  func.func @transform_7(%arg0: i32) -> (i32, i32) {
    %c0_i32 = arith.constant 0 : i32
    %c0_i32_0 = arith.constant 0 : i32
    return %arg0, %c0_i32 : i32, i32
  }
}

</mosaic_0001>

<bundles_post_ra>
// kernel: tpu_custom_call.1
= control target key start
LH: loop header
LB: loop body
LE: loop exit
PB: predicated region body
PF: predicated region fallthrough
CT: control target
= control target key end

     0   :  { %v570_v1 = vmov 0.0   ;;  %vm571_vm0 = vmmov 0   ;;  %vm44_vm1 = vcmask 130048   ;;  %s728_s0 = inlined_call_operand.vmem [shape: bf16[8,16], index: 0, kind: input, shape index: {}]   ;;  %s729_s1 = inlined_call_operand.vmem [shape: bf16[16,128], index: 1, kind: input, shape index: {}]   ;;  %s730_s2 = inlined_call_operand.vmem [shape: f32[1,128], index: 2, kind: input, shape index: {}]   ;;  %s731_s3 = inlined_call_operand.vmem [shape: bf16[128,256], index: 3, kind: input, shape index: {}]   ;;  %s732_s4 = inlined_call_operand.vmem [shape: f32[1,256], index: 4, kind: input, shape index: {}]   ;;  %s733_s5 = inlined_call_operand.vmem [shape: bf16[256,10], index: 5, kind: input, shape index: {}]   ;;  %s734_s6 = inlined_call_operand.vmem [shape: f32[1,10], index: 6, kind: input, shape index: {}]   ;;  %s735_s7 = inlined_call_operand.hbm [shape: f32[8,10], index: 7, kind: output, shape index: {}]  }
   0x1   :  { %v505_v0 = vld [vmem:[%s729_s1] sm:$0xff]   ;;  %495 = vmatprep.subr.bf16.mxu0 %v570_v1  ;;  %497 = vmatprep.mubr.msk.bf16.mxu0 %vm571_vm0, %v570_v1  ;;  %v506_v3 = vld [vmem:[%s731_s3 + $0x74] ss:$8 sps:$4 sm:$0xff]   ;;  %v508_v4 = vld [vmem:[%s731_s3 + $0x70] ss:$8 sps:$4 sm:$0xff]  }
   0x2   :  { %v28_v2 = vld [vmem:[%s728_s0] sm:$0xf]  ;;  %496 = vmatpush3.bf16.msra.mxu0 %v505_v0  ;;  %v509_v5 = vld [vmem:[%s731_s3 + $0x64] ss:$8 sps:$4 sm:$0xff]   ;;  %198 = vmatprep.subr.bf16.mxu1 %v506_v3  ;;  %v512_v7 = vld [vmem:[%s731_s3 + $0x54] ss:$8 sps:$4 sm:$0xff]  }
   0x3   :  { %199 = vmatpush1.bf16.msra.mxu1 %v508_v4  ;;  %v511_v6 = vld [vmem:[%s731_s3 + $0x60] ss:$8 sps:$4 sm:$0xff]   ;;  %v514_v8 = vld [vmem:[%s731_s3 + $0x50] ss:$8 sps:$4 sm:$0xff]   ;;  %v515_v9 = vld [vmem:[%s731_s3 + $0x44] ss:$8 sps:$4 sm:$0xff]  }
   0x4   :  { %200 = vmatprep.subr.bf16.mxu1 %v509_v5  ;;  %v517_v10 = vld [vmem:[%s731_s3 + $0x40] ss:$8 sps:$4 sm:$0xff]   ;;  %v518_v11 = vld [vmem:[%s731_s3 + $0x34] ss:$8 sps:$4 sm:$0xff]   ;;  %v520_v12 = vld [vmem:[%s731_s3 + $0x30] ss:$8 sps:$4 sm:$0xff]  }
   0x5   :  { %498 = vmatmul.mubr.msk.bf16.vlgmr.msra.gmra.mxu0 %vm44_vm1, %v28_v2  ;;  %v521_v13 = vld [vmem:[%s731_s3 + $0x24] ss:$8 sps:$4 sm:$0xff]   ;;  %v523_v14 = vld [vmem:[%s731_s3 + $0x20] ss:$8 sps:$4 sm:$0xff]   ;;  %v524_v15 = vld [vmem:[%s731_s3 + $0x14] ss:$8 sps:$4 sm:$0xff]  }
   0x7   :  { %201 = vmatpush1.bf16.msra.mxu1 %v511_v6 }
   0x8   :  { %202 = vmatprep.subr.bf16.mxu1 %v512_v7 }
   0xb   :  { %203 = vmatpush1.bf16.msra.mxu1 %v514_v8 }
   0xc   :  { %204 = vmatprep.subr.bf16.mxu1 %v515_v9 }
   0xf   :  { %205 = vmatpush1.bf16.msra.mxu1 %v517_v10 }
  0x10   :  { %206 = vmatprep.subr.bf16.mxu1 %v518_v11 }
  0x13   :  { %207 = vmatpush1.bf16.msra.mxu1 %v520_v12 }
  0x14   :  { %208 = vmatprep.subr.bf16.mxu1 %v521_v13 }
  0x15   :  { %12 = vsyncpa [#allocation3], 0  ;;  %v526_v16 = vld [vmem:[%s731_s3 + $0x10] ss:$8 sps:$4 sm:$0xff]   ;;  %v527_v17 = vld [vmem:[%s731_s3 + $0x4] ss:$8 sps:$4 sm:$0xff]   ;;  %v108_v44 = vlaneseq }
  0x16   :  { %v529_v18 = vld [vmem:[%s731_s3] ss:$8 sps:$4 sm:$0xff]   ;;  %v572_v19 = vmov 0   ;;  %v530_v20 = vld [vmem:[%s733_s5 + $0x78] sm:$0xff]   ;;  %v532_v22 = vld [vmem:[%s733_s5 + $0x70] sm:$0xff]   ;;  %vm419_vm2 = vcmask 80896  }
  0x17   :  { %209 = vmatpush1.bf16.msra.mxu1 %v523_v14  ;;  %230 = vmatprep.mubr.bf16.mxu1 %v572_v19  ;;  %v531_v21 = vld [vmem:[%s733_s5 + $0x38] sm:$0xff]   ;;  %v533_v23 = vld [vmem:[%s733_s5 + $0x30] sm:$0xff]   ;;  %v534_v24 = vld [vmem:[%s733_s5 + $0x68] sm:$0xff]   ;;  %v109_v45 = vshrl.u32 %v108_v44, 7 }
  0x18   :  { %210 = vmatprep.subr.bf16.mxu1 %v524_v15  ;;  %473 = vmatprep.subr.bf16.mxu0 %v530_v20  ;;  %v535_v25 = vld [vmem:[%s733_s5 + $0x28] sm:$0xff]   ;;  %v536_v26 = vld [vmem:[%s733_s5 + $0x60] sm:$0xff]   ;;  %v538_v28 = vld [vmem:[%s733_s5 + $0x58] sm:$0xff]  }
  0x19   :  { %474 = vmatpush3.bf16.msra.mxu0 %v531_v21  ;;  %v537_v27 = vld [vmem:[%s733_s5 + $0x20] sm:$0xff]   ;;  %v539_v29 = vld [vmem:[%s733_s5 + $0x18] sm:$0xff]   ;;  %v540_v30 = vld [vmem:[%s733_s5 + $0x50] sm:$0xff]   ;;  %v110_v46 = vsub.s32 0, %v109_v45  ;;  %v114_v48 = vsub.s32 1, %v109_v45 }
  0x1a   :  { %475 = vmatprep.subr.bf16.mxu0 %v532_v22  ;;  %v541_v31 = vld [vmem:[%s733_s5 + $0x10] sm:$0xff]   ;;  %v435_v32 = vld [vmem:[%s730_s2] ss:$0 sm:$0xff]  ;;  %v542_v40 = vld [vmem:[%s733_s5 + $0x48] sm:$0xff]  }
  0x1b   :  { %211 = vmatpush1.bf16.msra.mxu1 %v526_v16  ;;  %v543_v41 = vld [vmem:[%s733_s5 + $0x8] sm:$0xff]   ;;  %v544_v42 = vld [vmem:[%s733_s5 + $0x40] sm:$0xff]  }
  0x1c   :  { %212 = vmatprep.subr.bf16.mxu1 %v527_v17  ;;  %v545_v43 = vld [vmem:[%s733_s5] sm:$0xff]  }
  0x1d   :  { %476 = vmatpush3.bf16.msra.mxu0 %v533_v23  ;;  %v106_v47 = vld [vmem:[%s732_s4] sm:$0x3]  ;;  %s573_s4 = smov [#allocation2]  }
  0x1e   :  { %477 = vmatprep.subr.bf16.mxu0 %v534_v24  ;;  %v111_v49 = vrot.slane %v106_v47, %v110_v46  ;;  %v115_v50 = vrot.slane %v106_v47, %v114_v48  ;;  %v454_v62 = vld [vmem:[%s734_s6] ss:$0 sm:$0xff]  ;;  %s427_s19 = sshll.u32 %s573_s4, 4  ;;  %s428_s19 = int_to_ptr.vmem [resolvable:$true] %s427_s19 }
  0x1f   :  { %213 = vmatpush1.bf16.msra.mxu1 %v529_v18  ;;  %s548_s20 = scalar_lea.vmem %s428_s19, 128  ;;  %p553_p1 = scmp.lt.s32.totalorder %s428_s19, %s428_s19 }
  0x20   :  { %p549_p0 = scmp.ne.s32.totalorder %s428_s19, %s548_s20  ;;  %p554_p2 = scmp.lt.s32.totalorder %s548_s20, %s548_s20 }
  0x21   :  { %478 = vmatpush3.bf16.msra.mxu0 %v535_v25 }
  0x22   :  { %479 = vmatprep.subr.bf16.mxu0 %v536_v26  ;;  %p555_p3 = por %p554_p2, %p553_p1 }
  0x24   :  { %p556_p4 = pnand %p555_p3, %p549_p0 }
  0x25   :  { %480 = vmatpush3.bf16.msra.mxu0 %v537_v27 }
  0x26   :  { %481 = vmatprep.subr.bf16.mxu0 %v538_v28 }
  0x29   :  { %482 = vmatpush3.bf16.msra.mxu0 %v539_v29 }
  0x2a   :  { %483 = vmatprep.subr.bf16.mxu0 %v540_v30 }
  0x2d   :  { %484 = vmatpush3.bf16.msra.mxu0 %v541_v31 }
  0x2e   :  { %485 = vmatprep.subr.bf16.mxu0 %v542_v40 }
  0x31   :  { %486 = vmatpush3.bf16.msra.mxu0 %v543_v41 }
  0x32   :  { %487 = vmatprep.subr.bf16.mxu0 %v544_v42 }
  0x35   :  { %488 = vmatpush3.bf16.msra.mxu0 %v545_v43 }
  0xc5   :  { %v82_v33 = vpop.f32.mrf.mxu0 }
  0xc6   :  { %v83_v34 = vadd.f32 %v435_v32, %v82_v33 }
  0xc7   :  { %v499_v35 = vpop.f32.mrf.mxu0 }
  0xc8   :  { %v88_v36 = vmax.f32 %v83_v34, 0.0 }
  0xc9   :  { %v85_v37 = vpop.f32.mrf.mxu0 }
  0xca   :  { %v89_v38 = vpack.c.bf16 %v88_v36, %v88_v36 }
  0xcb   :  { %v500_v39 = vpop.f32.mrf.mxu0 }
  0xcc   :  { %231 = vmatmul.mubr.bf16.vlgmr.msra.gmra.mxu1 %v89_v38 }
 0x18c   :  { %v232_v51 = vpop.f32.mrf.mxu1 }
 0x18d   :  { %v233_v52 = vadd.f32 %v232_v51, %v111_v49 }
 0x18e   :  { %v234_v53 = vpop.f32.mrf.mxu1 }
 0x18f   :  { %v235_v54 = vadd.f32 %v234_v53, %v115_v50  ;;  %v239_v55 = vmax.f32 %v233_v52, 0.0 }
 0x190   :  { %v236_v56 = vpop.f32.mrf.mxu1 }
 0x191   :  { %v240_v57 = vmax.f32 %v235_v54, 0.0  ;;  %v241_v60 = vpack.c.bf16 %v239_v55, %v239_v55 }
 0x192   :  { %v237_v58 = vpop.f32.mrf.mxu1 }
 0x193   :  { %v242_v59 = vpack.c.bf16 %v240_v57, %v240_v57 }
 0x195   :  { %410 = vmatprep.mubr.bf16.mxu0 %v242_v59 }
 0x196   :  { %411 = vmatmul.mubr.bf16.vlgmr.msra.gmra.mxu0 %v241_v60 }
 0x256   :  { %v489_v61 = vpop.f32.mrf.mxu0 }
 0x258   :  { %v490_v63 = vpop.f32.mrf.mxu0 }
 0x259   :  { %v491_v0 = vadd.f32 %v490_v63, %v489_v61 }
 0x25a   :  { %v492_v1 = vpop.f32.mrf.mxu0 }
 0x25b   :  { %v413_v2 = vadd.f32 %v491_v0, %v454_v62 }
 0x25c   :  { %v493_v3 = vpop.f32.mrf.mxu0 }
 0x25d   :  { %546 = vtanh.f32 %v413_v2 }
 0x26a   :  { %v547_v4 = vpop.eup %546 }
 0x26b   :  { %420 = vst.msk [vmem:[#allocation2] sm:$0xff] %vm419_vm2, %v547_v4 }
 0x26c   :  { %559 = shalt.err (!%p556_p4)
}
 0x26d   :  { %430 = dma.vmem_to_hbm [thread:$0]  %s428_s19, 128, %s735_s7, [#allocation3]  }
 0x26e   :  { %568 = dma.done.wait [#allocation3], 128  }
 0x26f   :  { %569 = vsyncadd [#allocation3], 4294967168 }
 0x270   :  { %434 = vsyncpa [#allocation3], 1 }

</bundles_post_ra>
